<compile_context>
chip_gen: v7x
topology: tpu7x:2x2x1
jax: 0.10.0
libtpu: 0.0.40
codegen_flags: <defaults>
</compile_context>

<pallas_src>
import math

import jax
import jax.numpy as jnp
from jax.experimental import pallas as pl
from jax.experimental.pallas import tpu as pltpu


def _round_up(x: int, m: int) -> int:
    return ((x + m - 1) // m) * m


def _cdiv(a: int, b: int) -> int:
    return (a + b - 1) // b


def identity_projection_weight(in_features: int, out_features: int) -> jnp.ndarray:
    """Replicates IdentityProjection.__init__ buffer construction (reference checks only)."""
    if in_features >= out_features:
        return jnp.eye(out_features, in_features, dtype=jnp.float32)
    w = jnp.zeros((out_features, in_features), dtype=jnp.float32)
    return w.at[:in_features, :].set(jnp.eye(in_features, dtype=jnp.float32))


def _chip_vmem_bytes() -> int:
    try:
        return int(pltpu.get_tpu_info().vmem_capacity_bytes)
    except Exception:
        return 64 * 1024 * 1024  # conservative (v7x-sized) fallback


def _is_v5_device() -> bool:
    try:
        return "v5" in jax.devices()[0].device_kind.lower()
    except Exception:
        return False


def _make_copy_kernel(out_cols: int, x_cols: int, has_bias: bool, compute_dtype):
    """Copy (optionally truncating the lane prefix) + bias add, single store."""
    truncate = x_cols > out_cols
    if has_bias:
        def kernel(x_ref, b_ref, o_ref):
            x = x_ref[:, :out_cols] if truncate else x_ref[...]
            o_ref[...] = (x.astype(compute_dtype) + b_ref[...]).astype(o_ref.dtype)
    else:
        def kernel(x_ref, o_ref):
            x = x_ref[:, :out_cols] if truncate else x_ref[...]
            o_ref[...] = x.astype(o_ref.dtype)
    return kernel


def _make_pad_kernel(in_features: int, out_features: int, has_bias: bool, compute_dtype):
    """Zero-pad tail + bias add, built once and stored with a single lane-dense store."""
    pad = out_features - in_features
    if has_bias:
        def kernel(x_ref, b_ref, o_ref):
            x = x_ref[...].astype(compute_dtype)
            zeros = jnp.zeros((x.shape[0], pad), compute_dtype)
            full = jnp.concatenate([x, zeros], axis=-1)
            o_ref[...] = (full + b_ref[...]).astype(o_ref.dtype)
    else:
        def kernel(x_ref, o_ref):
            x = x_ref[...]
            zeros = jnp.zeros((x.shape[0], pad), x.dtype)
            o_ref[...] = jnp.concatenate([x, zeros], axis=-1).astype(o_ref.dtype)
    return kernel


def identity_projection_forward(x: jnp.ndarray,
                                in_features: int,
                                out_features: int,
                                bias: jnp.ndarray | None = None,
                                *,
                                block_m: int | None = None) -> jnp.ndarray:
    """Forward pass of IdentityProjection via a Pallas TPU copy/pad + bias kernel."""
    assert x.shape[-1] == in_features
    lead = x.shape[:-1]
    dtype = x.dtype
    m = int(math.prod(lead)) if lead else 1
    itemsize = jnp.dtype(dtype).itemsize
    sub = {4: 8, 2: 16, 1: 32}.get(itemsize, 8)  # sublane granularity for this dtype
    has_bias = bias is not None

    # Fast path (a): exact identity, no bias -> no HBM round trip at all.
    if in_features == out_features and not has_bias:
        return x

    # Bias-add dtype: bf16-native VALUs on v6e/v7x; f32 accumulate elsewhere.
    if dtype == jnp.bfloat16 and not _is_v5_device():
        compute_dtype = jnp.bfloat16
    else:
        compute_dtype = jnp.float32

    # Fast path (b): tiny problems -> pallas_call/grid-step overhead dominates; use XLA.
    if m < 2 * sub or m * out_features < 4096:
        if in_features >= out_features:
            y = x[..., :out_features]
        else:
            zpad = jnp.zeros(lead + (out_features - in_features,), dtype)
            y = jnp.concatenate([x, zpad], axis=-1)
        if has_bias:
            y = (y.astype(compute_dtype) + bias.astype(compute_dtype)).astype(dtype)
        return y

    x2d = x.reshape(m, in_features)

    # Truncation: DMA only a 128-aligned column prefix (or the whole row if shorter).
    if in_features > out_features:
        x_block_k = min(in_features, _round_up(out_features, 128))
    else:
        x_block_k = in_features
    zero_pad = out_features > in_features

    # Chip-dependent VMEM budget for the double-buffered working set.
    vmem_cap = _chip_vmem_bytes()
    if vmem_cap >= 96 * 1024 * 1024:     # v5e / v6e: 128 MiB physical VMEM
        budget = 48 * 1024 * 1024
        vmem_limit = 100 * 1024 * 1024
    else:                                # v7x: 64 MiB physical VMEM
        budget = 24 * 1024 * 1024
        vmem_limit = 48 * 1024 * 1024

    bytes_per_row = 2 * (x_block_k + out_features) * itemsize  # x2: double buffering

    # Ultra-wide rows: tile the feature dimension too (truncation/identity only).
    feature_tiled = (sub * bytes_per_row > budget) and not zero_pad
    # TODO(synk): feature-dim tiling for the zero-pad (in < out) ultra-wide case;
    # such shapes currently fall back to block_m == sublane rows.
    block_n = out_features
    if feature_tiled:
        block_n = min(_round_up(out_features, 128), 2048)
        bytes_per_row = 2 * (2 * block_n) * itemsize

    if block_m is None:
        block_m = budget // max(bytes_per_row, 1)
    block_m = max(sub, min(block_m, 4096, _round_up(m, sub)))
    block_m = max(sub, (block_m // sub) * sub)
    if block_m >= m and m > 2 * sub:
        # Split M across >= 2 tiles: both v7x TensorCores stream, and DMA
        # overlaps compute even on a single core.
        block_m = _round_up(_cdiv(m, 2), sub)
    grid_m = _cdiv(m, block_m)  # ragged last tile is masked by Pallas (no wrapper pad)

    bytes_accessed = m * (min(x_block_k, in_features) + out_features) * itemsize
    if has_bias:
        bytes_accessed += out_features * jnp.dtype(compute_dtype).itemsize
    cost = pl.CostEstimate(flops=(m * out_features) if has_bias else 0,
                           transcendentals=0, bytes_accessed=bytes_accessed)

    args = [x2d]
    if feature_tiled:
        grid = (grid_m, _cdiv(out_features, block_n))
        kernel = _make_copy_kernel(block_n, block_n, has_bias, compute_dtype)
        in_specs = [pl.BlockSpec((block_m, block_n), lambda i, j: (i, j))]
        if has_bias:
            in_specs.append(pl.BlockSpec((1, block_n), lambda i, j: (0, j)))
            args.append(bias.reshape(1, out_features).astype(compute_dtype))
        out_spec = pl.BlockSpec((block_m, block_n), lambda i, j: (i, j))
        dims = ("parallel", "parallel")
    else:
        grid = (grid_m,)
        if zero_pad:
            kernel = _make_pad_kernel(in_features, out_features, has_bias, compute_dtype)
        else:
            kernel = _make_copy_kernel(out_features, x_block_k, has_bias, compute_dtype)
        in_specs = [pl.BlockSpec((block_m, x_block_k), lambda i: (i, 0))]
        if has_bias:
            # Constant index_map -> bias stays VMEM-resident across all M tiles.
            in_specs.append(pl.BlockSpec((1, out_features), lambda i: (0, 0)))
            args.append(bias.reshape(1, out_features).astype(compute_dtype))
        out_spec = pl.BlockSpec((block_m, out_features), lambda i: (i, 0))
        dims = ("parallel",)

    out2d = pl.pallas_call(
        kernel,
        out_shape=jax.ShapeDtypeStruct((m, out_features), dtype),
        grid_spec=pl.GridSpec(grid=grid, in_specs=in_specs, out_specs=out_spec),
        compiler_params=pltpu.CompilerParams(
            dimension_semantics=dims,
            vmem_limit_bytes=vmem_limit,
        ),
        cost_estimate=cost,
    )(*args)

    return out2d.reshape(*lead, out_features)


if __name__ == "__main__":
    key = jax.random.PRNGKey(0)
    k1, k2, k3, k4, k5 = jax.random.split(key, 5)

    # Case A: truncation, 128-multiple output, bias, ragged M (exercises the
    # prefix-DMA path, >=2 parallel M tiles, and masked ragged last tile).
    in_a, out_a = 384, 256
    xa = jax.random.normal(k1, (2, 130, in_a), dtype=jnp.float32)
    ba = jax.random.normal(k2, (out_a,), dtype=jnp.float32)
    outa = jax.block_until_ready(identity_projection_forward(xa, in_a, out_a, ba))
    refa = xa @ identity_projection_weight(in_a, out_a).T + ba
    assert outa.shape == (2, 130, out_a)
    assert jnp.allclose(outa, refa, atol=1e-5, rtol=1e-5)

    # Case B: truncation with out NOT a multiple of 128 -> 128-rounded prefix DMA
    # (256 of 512 columns) + in-kernel lane slice to 200.
    in_b, out_b = 512, 200
    xb = jax.random.normal(k3, (2, 64, in_b), dtype=jnp.float32)
    bb = jax.random.normal(k4, (out_b,), dtype=jnp.float32)
    outb = jax.block_until_ready(identity_projection_forward(xb, in_b, out_b, bb))
    refb = xb @ identity_projection_weight(in_b, out_b).T + bb
    assert outb.shape == (2, 64, out_b)
    assert jnp.allclose(outb, refb, atol=1e-5, rtol=1e-5)

    # Case C: zero-pad, bias=None (single lane-dense store via concat, no bias DMA).
    in_c, out_c = 192, 256
    xc = jax.random.normal(k5, (2, 64, in_c), dtype=jnp.float32)
    outc = jax.block_until_ready(identity_projection_forward(xc, in_c, out_c, None))
    refc = xc @ identity_projection_weight(in_c, out_c).T
    assert outc.shape == (2, 64, out_c)
    assert jnp.allclose(outc, refc, atol=1e-5, rtol=1e-5)

    # Case D: zero-pad with bias in bf16 (native-dtype bias add on v6e/v7x).
    in_d, out_d = 128, 384
    xd = jax.random.normal(k1, (2, 64, in_d), dtype=jnp.bfloat16)
    bd = jax.random.normal(k2, (out_d,), dtype=jnp.float32)
    outd = jax.block_until_ready(identity_projection_forward(xd, in_d, out_d, bd))
    refd = xd.astype(jnp.float32) @ identity_projection_weight(in_d, out_d).T + bd
    assert outd.shape == (2, 64, out_d)
    assert jnp.allclose(outd.astype(jnp.float32), refd, atol=5e-2, rtol=5e-2)

    # Case E: tiny / narrow shapes -> XLA fast path (matches module's small usage).
    in_e, out_e = 32, 16
    xe = jax.random.normal(k3, (2, 8, in_e), dtype=jnp.float32)
    be = jnp.zeros((out_e,), dtype=jnp.float32)
    oute = jax.block_until_ready(identity_projection_forward(xe, in_e, out_e, be))
    refe = xe @ identity_projection_weight(in_e, out_e).T + be
    assert jnp.allclose(oute, refe, atol=1e-5, rtol=1e-5)

    # Case F: in == out, bias=None -> pure no-op fast path.
    xf = jax.random.normal(k4, (2, 8, 32), dtype=jnp.float32)
    outf = jax.block_until_ready(identity_projection_forward(xf, 32, 32, None))
    assert jnp.allclose(outf, xf)

    print("KERNEL_OK")
</pallas_src>

<mosaic_0001>
module attributes {stable_mosaic.version = 11 : i64} {
  func.func @kernel(%arg0: i32, %arg1: memref<136x256xf32, #tpu.memory_space<vmem>>, %arg2: memref<1x256xf32, #tpu.memory_space<vmem>>, %arg3: memref<136x256xf32, #tpu.memory_space<vmem>>) attributes {dimension_semantics = [#tpu.dimension_semantics<parallel>], iteration_bounds = array<i64: 2>, scalar_prefetch = 0 : i64, scratch_operands = 0 : i64, tpu.core_type = #tpu.core_type<tc>, window_params = [{transform_indices = @transform_0, window_bounds = array<i64: 136, 256>}, {pipeline_mode = #tpu.pipeline_mode<synchronous>, transform_indices = @transform_1, window_bounds = array<i64: 1, 256>}, {transform_indices = @transform_2, window_bounds = array<i64: 136, 256>}]} {
    %c0 = arith.constant 0 : index
    %c0_0 = arith.constant 0 : index
    %0 = vector.load %arg1[%c0, %c0_0] : memref<136x256xf32, #tpu.memory_space<vmem>>, vector<136x256xf32>
    %c0_1 = arith.constant 0 : index
    %c0_2 = arith.constant 0 : index
    %1 = vector.load %arg2[%c0_1, %c0_2] : memref<1x256xf32, #tpu.memory_space<vmem>>, vector<1x256xf32>
    %2 = vector.broadcast %1 : vector<1x256xf32> to vector<136x256xf32>
    %3 = arith.addf %0, %2 : vector<136x256xf32>
    %c0_3 = arith.constant 0 : index
    %c0_4 = arith.constant 0 : index
    %4 = vector.load %arg3[%c0_3, %c0_4] : memref<136x256xf32, #tpu.memory_space<vmem>>, vector<136x256xf32>
    tpu.vector_store %arg3[%c0_3, %c0_4], %3 {strides = array<i32>} : memref<136x256xf32, #tpu.memory_space<vmem>>, vector<136x256xf32>,
    return
  }
  func.func @transform_0(%arg0: i32) -> (i32, i32) {
    %c0_i32 = arith.constant 0 : i32
    %c0_i32_0 = arith.constant 0 : i32
    return %arg0, %c0_i32 : i32, i32
  }
  func.func @transform_1(%arg0: i32) -> (i32, i32) {
    %c0_i32 = arith.constant 0 : i32
    %c0_i32_0 = arith.constant 0 : i32
    %c0_i32_1 = arith.constant 0 : i32
    return %c0_i32, %c0_i32_0 : i32, i32
  }
  func.func @transform_2(%arg0: i32) -> (i32, i32) {
    %c0_i32 = arith.constant 0 : i32
    %c0_i32_0 = arith.constant 0 : i32
    return %arg0, %c0_i32 : i32, i32
  }
}

</mosaic_0001>

<bundles_post_ra>
// kernel: tpu_custom_call.1
= control target key start
LH: loop header
LB: loop body
LE: loop exit
PB: predicated region body
PF: predicated region fallthrough
CT: control target
= control target key end

     0   :  { %7 = vsyncpa [#allocation3], 0  ;;  %s869_s0 = inlined_call_operand.hbm [shape: f32[260,384], index: 0, kind: input, shape index: {}]   ;;  %s870_s1 = inlined_call_operand.vmem [shape: f32[1,256], index: 1, kind: input, shape index: {}]   ;;  %s871_s2 = inlined_call_operand.hbm [shape: f32[260,256], index: 2, kind: output, shape index: {}]  }
   0x1   :  { %9 = vsyncpa [#allocation3 + $0x1], 0 }
   0x2   :  { %10 = vsyncpa [#allocation4], 0 }
   0x3   :  { %12 = vsyncpa [#allocation4 + $0x1], 0  ;;  %s581_s9 = smov 0   ;;  %s583_s10 = smov 0  }
   0x4   :  { %s585_s11 = smov 0   ;;  %s587_s12 = smov 0  }
   0x5 LB: > { %s602_s13 = sadd.s32 4294967295, %s557_s12   ;;  %s391_s14 = sadd.s32 4294967294, %s557_s12   ;;  %s557_s12 = sphi %s587_s12, %s881_s12   ;;  %s553_s11 = sphi %s585_s11, %s880_s11   ;;  %s549_s10 = sphi %s583_s10, %s879_s10   ;;  %s545_s9 = sphi %s581_s9, %s878_s9  }
   0x6   : > { %s606_s15 = sadd.s32 1, %s557_s12   ;;  %s25_s16 = sadd.s32 1, %s553_s11 }
   0x7   : > { %s22_s17 = ssub.s32 %s557_s12, %s606_s15  ;;  %p32_p0 = scmp.ne.s32.totalorder %s553_s11, %s549_s10 }
   0x8   : > { %p23_p1 = scmp.eq.s32.totalorder %s22_s17, 0  ;;  %p33_p2 = scmp.eq.s32.totalorder %s557_s12, 0 }
   0x9   : > { %p38_p3 = scmp.ne.s32.totalorder %s549_s10, %s545_s9  ;;  %p39_p4 = scmp.eq.s32.totalorder %s602_s13, 0 }
   0xa   : > { %s618_s18 = scalar_select %p23_p1, %s553_s11, %s25_s16  }
   0xb   : > { %p34_p5 = por %p33_p2, %p32_p0  ;;  %p620_p6 = por %p39_p4, %p38_p3 }
   0xc   : > { %p83_p7 = scmp.eq.s32.totalorder %s602_s13, 1  ;;  %p89_p8 = scmp.eq.s32.totalorder %s391_s14, 1 }
   0xd   : > { %p872_p11 = scmp.ge.s32.totalorder %s557_s12, 2 }
   0xe   : > { %p625_p9 = por %p83_p7, %p32_p0  ;;  %p629_p10 = por %p89_p8, %p38_p3 }
   0xf   : > { %108 = sbr.rel (%p872_p11) target bundleno = 58 (0x3a), region = 20 }
  0x10   : > { %s875_s21 = scalar_select %p629_p10, 1, 0 }
  0x16   : > { %111 = sbr.rel (!%p34_p5) target bundleno = 58 (0x3a), region = 24  ;;  %s112_s22 = sand.u32 (%p34_p5), 1, %s553_s11  }
  0x17   : > { %s117_s23 = smul.u32 (%p34_p5), 17, %s557_s12  ;;  %s641_s28 = scalar_lea.sflag (%p34_p5), [#allocation3], %s112_s22 }
  0x18   : > { %s415_s24 = smul.u32 (%p34_p5), 272, %s112_s22 }
  0x19   : > { %s118_s25 = ssub.s32 (%p34_p5), 33, %s117_s23 }
  0x1a   : > { %p119_p12 = scmp.lt.s32.totalorder (%p34_p5), %s118_s25, 17  ;;  %s116_s29 = scalar_lea.vmem (%p34_p5), [#allocation2], %s415_s24 }
  0x1d   : > { %s883_s25 = smov (!%p119_p12, %s118_s25), 17 }
  0x1e   : > { %s638_s26 = sshll.u32 %s883_s25, 8 }
  0x1f   : > { %s124_s27 = ssub.s32 4352, %s638_s26 }
  0x20   : > { %125 = vsyncadd %s641_s28, %s124_s27  ;;  %p396_p13 = scmp.ne.s32.totalorder %s638_s26, 0  ;;  %s424_s30 = smul.u32 6528, %s557_s12 }
  0x21   : > { %s131_s3 = sshll.u32 %s116_s29, 4  ;;  %s467_s16 = scalar_lea.hbm %s869_s0, 12672  ;;  %s651_s3 = int_to_ptr.vmem [resolvable:$true] %s131_s3 }
  0x22   : > { %s649_s6 = scalar_lea.hbm %s869_s0, %s424_s30 }
  0x23   : > { %s463_s7 = scalar_lea.hbm %s649_s6, %s638_s26  ;;  %p468_p3 = scmp.lt.u32.totalorder %s649_s6, %s869_s0 }
  0x24   : > { %p464_p0 = scmp.ne.s32.totalorder %s649_s6, %s463_s7  ;;  %p469_p4 = scmp.lt.u32.totalorder %s467_s16, %s463_s7 }
  0x25   : > { %p471_p7 = scmp.lt.u32.totalorder %s463_s7, %s649_s6 }
  0x26   : > { %p465_p1 = pnand %p464_p0, %p396_p13  ;;  %p470_p5 = por %p469_p4, %p468_p3 }
  0x28   : > { %p466_p2 = pneg %p465_p1  ;;  %p472_p8 = por %p471_p7, %p470_p5 }
  0x2a   : > { %p473_p12 = pnand %p472_p8, %p466_p2 }
  0x2c   : > { %476 = shalt.err (!%p473_p12)
}
  0x2d   : > { %s477_s23 = scalar_lea.vmem %s651_s3, %s638_s26  ;;  %s559_s24 = smov [#allocation2]  }
  0x2e   : > { %p478_p0 = scmp.ne.s32.totalorder %s651_s3, %s477_s23  ;;  %s481_s25 = sshll.u32 %s559_s24, 4  ;;  %s482_s25 = int_to_ptr.vmem [resolvable:$false] %s481_s25 }
  0x2f   : > { %s483_s27 = scalar_lea.vmem %s482_s25, 8704  ;;  %p484_p10 = scmp.lt.s32.totalorder %s651_s3, %s482_s25 }
  0x30   : > { %p479_p1 = pnand %p478_p0, %p396_p13  ;;  %p485_p3 = scmp.lt.s32.totalorder %s483_s27, %s477_s23 }
  0x32   : > { %p480_p11 = pneg %p479_p1  ;;  %p486_p4 = por %p485_p3, %p484_p10 }
  0x34   : > { %p487_p5 = pnand %p486_p4, %p480_p11 }
  0x36   : > { %490 = shalt.err (!%p487_p5)
}
  0x37   : > { %s560_s29 = smov 384   ;;  %s561_s30 = smov 256  }
  0x38   : > { %s562_s4 = smov 16  }
  0x39   : > { %137 = dma.hbm_to_vmem [thread:$0]  (%p396_p13), %s649_s6, %s638_s26, %s651_s3, %s641_s28, %s560_s29, %s561_s30, %s562_s4  }
  0x3a PF: > { %p400_p2 = scmp.ge.s32.totalorder %s557_s12, 1  ;;  %p139_p7 = scmp.lt.s32.totalorder %s557_s12, 3 }
  0x3c   : > { %p140_p8 = pnand %p400_p2, %p139_p7 }
  0x3d   : > { %s681_s5 = sand.u32 (!%p140_p8), 1, %s549_s10  }
  0x3e   : > { %143 = sbr.rel (%p140_p8) target bundleno = 125 (0x7d), region = 28  ;;  %s146_s8 = scalar_lea.sflag (!%p140_p8), [#allocation3], %s681_s5 }
  0x3f   : > { %s417_s7 = smul.u32 (!%p140_p8), 272, %s681_s5 }
  0x41   : > { %s687_s14 = scalar_lea.vmem (!%p140_p8), [#allocation2], %s417_s7 }
  0x45   : > { %536 = dma.done.wait (%p620_p6), %s146_s8, 4352  }
  0x46   : > { %538 = vsyncadd (%p620_p6), %s146_s8, 4294962944  ;;  %v218_v0 = vlaneseq  ;;  %v182_v4 = vld [vmem:[%s687_s14] sm:$0xff]  ;;  %v183_v6 = vld [vmem:[%s687_s14 + $0x8] sm:$0xff]  ;;  %s724_s19 = scalar_lea.vmem [#allocation5], %s417_s7  ;;  %s297_s3 = scalar_lea.sflag [#allocation4], %s681_s5 }
  0x47   : > { %v216_v5 = vld [vmem:[%s870_s1] sm:$0x3]  ;;  %v185_v10 = vld [vmem:[%s687_s14 + $0x18] sm:$0xff]  ;;  %v187_v12 = vld [vmem:[%s687_s14 + $0x28] sm:$0xff]  ;;  %s304_s6 = smul.u32 (%p625_p9), 17, %s602_s13 }
  0x48   : > { %v219_v1 = vshrl.u32 %v218_v0, 7  ;;  %v184_v9 = vld [vmem:[%s687_s14 + $0x10] sm:$0xff]  ;;  %v186_v11 = vld [vmem:[%s687_s14 + $0x20] sm:$0xff]  ;;  %v189_v14 = vld [vmem:[%s687_s14 + $0x38] sm:$0xff] }
  0x49   : > { %v188_v13 = vld [vmem:[%s687_s14 + $0x30] sm:$0xff]  ;;  %v190_v19 = vld [vmem:[%s687_s14 + $0x40] sm:$0xff]  ;;  %v191_v20 = vld [vmem:[%s687_s14 + $0x48] sm:$0xff]  ;;  %s305_s16 = ssub.s32 (%p625_p9), 33, %s304_s6 }
  0x4a   : > { %v220_v2 = vsub.s32 0, %v219_v1  ;;  %v224_v3 = vsub.s32 1, %v219_v1  ;;  %v192_v21 = vld [vmem:[%s687_s14 + $0x50] sm:$0xff]  ;;  %v193_v26 = vld [vmem:[%s687_s14 + $0x58] sm:$0xff]  ;;  %v194_v27 = vld [vmem:[%s687_s14 + $0x60] sm:$0xff]  ;;  %p306_p6 = scmp.lt.s32.totalorder (%p625_p9), %s305_s16, 17 }
  0x4b   : > { %v195_v28 = vld [vmem:[%s687_s14 + $0x68] sm:$0xff]  ;;  %v196_v33 = vld [vmem:[%s687_s14 + $0x70] sm:$0xff]  ;;  %v197_v34 = vld [vmem:[%s687_s14 + $0x78] sm:$0xff] }
  0x4c   : > { %v698_v7 = vrot.slane %v216_v5, %v220_v2  ;;  %v700_v8 = vrot.slane %v216_v5, %v224_v3  ;;  %v198_v35 = vld [vmem:[%s687_s14 + $0x80] sm:$0xff]  ;;  %v199_v40 = vld [vmem:[%s687_s14 + $0x88] sm:$0xff]  ;;  %v200_v41 = vld [vmem:[%s687_s14 + $0x90] sm:$0xff] }
  0x4d   : > { %v201_v42 = vld [vmem:[%s687_s14 + $0x98] sm:$0xff]  ;;  %v202_v47 = vld [vmem:[%s687_s14 + $0xa0] sm:$0xff]  ;;  %v203_v48 = vld [vmem:[%s687_s14 + $0xa8] sm:$0xff] }
  0x4e   : > { %v228_v15 = vadd.f32 %v698_v7, %v182_v4  ;;  %v229_v16 = vadd.f32 %v700_v8, %v183_v6  ;;  %v230_v17 = vadd.f32 %v698_v7, %v184_v9  ;;  %v231_v18 = vadd.f32 %v700_v8, %v185_v10  ;;  %v204_v49 = vld [vmem:[%s687_s14 + $0xb0] sm:$0xff]  ;;  %v205_v53 = vld [vmem:[%s687_s14 + $0xb8] sm:$0xff]  ;;  %v206_v54 = vld [vmem:[%s687_s14 + $0xc0] sm:$0xff] }
  0x4f   : > { %v232_v22 = vadd.f32 %v698_v7, %v186_v11  ;;  %v233_v23 = vadd.f32 %v700_v8, %v187_v12  ;;  %v234_v24 = vadd.f32 %v698_v7, %v188_v13  ;;  %v235_v25 = vadd.f32 %v700_v8, %v189_v14  ;;  %v207_v55 = vld [vmem:[%s687_s14 + $0xc8] sm:$0xff]  ;;  %v208_v59 = vld [vmem:[%s687_s14 + $0xd0] sm:$0xff]  ;;  %v209_v60 = vld [vmem:[%s687_s14 + $0xd8] sm:$0xff] }
  0x50   : > { %262 = vst [vmem:[%s724_s19] sm:$0xff] %v228_v15  ;;  %263 = vst [vmem:[%s724_s19 + $0x8] sm:$0xff] %v229_v16  ;;  %v236_v29 = vadd.f32 %v698_v7, %v190_v19  ;;  %v237_v30 = vadd.f32 %v700_v8, %v191_v20  ;;  %v238_v31 = vadd.f32 %v698_v7, %v192_v21  ;;  %v210_v61 = vld [vmem:[%s687_s14 + $0xe0] sm:$0xff]  ;;  %v211_v1 = vld [vmem:[%s687_s14 + $0xe8] sm:$0xff] }
  0x51   : > { %264 = vst [vmem:[%s724_s19 + $0x10] sm:$0xff] %v230_v17  ;;  %265 = vst [vmem:[%s724_s19 + $0x18] sm:$0xff] %v231_v18  ;;  %v239_v32 = vadd.f32 %v700_v8, %v193_v26  ;;  %v240_v36 = vadd.f32 %v698_v7, %v194_v27  ;;  %v241_v37 = vadd.f32 %v700_v8, %v195_v28  ;;  %v212_v2 = vld [vmem:[%s687_s14 + $0xf0] sm:$0xff]  ;;  %v213_v3 = vld [vmem:[%s687_s14 + $0xf8] sm:$0xff] }
  0x52   : > { %266 = vst [vmem:[%s724_s19 + $0x20] sm:$0xff] %v232_v22  ;;  %267 = vst [vmem:[%s724_s19 + $0x28] sm:$0xff] %v233_v23  ;;  %v242_v38 = vadd.f32 %v698_v7, %v196_v33  ;;  %v243_v39 = vadd.f32 %v700_v8, %v197_v34  ;;  %v244_v43 = vadd.f32 %v698_v7, %v198_v35  ;;  %v214_v9 = vld [vmem:[%s687_s14 + $0x100] sm:$0xff]  ;;  %v215_v10 = vld [vmem:[%s687_s14 + $0x108] sm:$0xff] }
  0x53   : > { %268 = vst [vmem:[%s724_s19 + $0x30] sm:$0xff] %v234_v24  ;;  %269 = vst [vmem:[%s724_s19 + $0x38] sm:$0xff] %v235_v25  ;;  %v245_v44 = vadd.f32 %v700_v8, %v199_v40  ;;  %v246_v45 = vadd.f32 %v698_v7, %v200_v41  ;;  %v247_v46 = vadd.f32 %v700_v8, %v201_v42 }
  0x54   : > { %270 = vst [vmem:[%s724_s19 + $0x40] sm:$0xff] %v236_v29  ;;  %271 = vst [vmem:[%s724_s19 + $0x48] sm:$0xff] %v237_v30  ;;  %v248_v50 = vadd.f32 %v698_v7, %v202_v47  ;;  %v249_v51 = vadd.f32 %v700_v8, %v203_v48  ;;  %v250_v52 = vadd.f32 %v698_v7, %v204_v49 }
  0x55   : > { %272 = vst [vmem:[%s724_s19 + $0x50] sm:$0xff] %v238_v31  ;;  %273 = vst [vmem:[%s724_s19 + $0x58] sm:$0xff] %v239_v32  ;;  %v251_v56 = vadd.f32 %v700_v8, %v205_v53  ;;  %v252_v57 = vadd.f32 %v698_v7, %v206_v54  ;;  %v253_v58 = vadd.f32 %v700_v8, %v207_v55 }
  0x56   : > { %274 = vst [vmem:[%s724_s19 + $0x60] sm:$0xff] %v240_v36  ;;  %275 = vst [vmem:[%s724_s19 + $0x68] sm:$0xff] %v241_v37  ;;  %v254_v62 = vadd.f32 %v698_v7, %v208_v59  ;;  %v255_v63 = vadd.f32 %v700_v8, %v209_v60  ;;  %v256_v0 = vadd.f32 %v698_v7, %v210_v61 }
  0x57   : > { %276 = vst [vmem:[%s724_s19 + $0x70] sm:$0xff] %v242_v38  ;;  %277 = vst [vmem:[%s724_s19 + $0x78] sm:$0xff] %v243_v39  ;;  %v257_v4 = vadd.f32 %v700_v8, %v211_v1  ;;  %v258_v5 = vadd.f32 %v698_v7, %v212_v2  ;;  %v259_v6 = vadd.f32 %v700_v8, %v213_v3 }
  0x58   : > { %278 = vst [vmem:[%s724_s19 + $0x80] sm:$0xff] %v244_v43  ;;  %279 = vst [vmem:[%s724_s19 + $0x88] sm:$0xff] %v245_v44  ;;  %v260_v11 = vadd.f32 %v698_v7, %v214_v9  ;;  %v261_v12 = vadd.f32 %v700_v8, %v215_v10 }
  0x59   : > { %280 = vst [vmem:[%s724_s19 + $0x90] sm:$0xff] %v246_v45  ;;  %281 = vst [vmem:[%s724_s19 + $0x98] sm:$0xff] %v247_v46 }
  0x5a   : > { %282 = vst [vmem:[%s724_s19 + $0xa0] sm:$0xff] %v248_v50  ;;  %283 = vst [vmem:[%s724_s19 + $0xa8] sm:$0xff] %v249_v51  ;;  %303 = sbr.rel (!%p625_p9) target bundleno = 125 (0x7d), region = 36 }
  0x5b   : > { %284 = vst [vmem:[%s724_s19 + $0xb0] sm:$0xff] %v250_v52  ;;  %285 = vst [vmem:[%s724_s19 + $0xb8] sm:$0xff] %v251_v56 }
  0x5c   : > { %286 = vst [vmem:[%s724_s19 + $0xc0] sm:$0xff] %v252_v57  ;;  %287 = vst [vmem:[%s724_s19 + $0xc8] sm:$0xff] %v253_v58 }
  0x5d   : > { %288 = vst [vmem:[%s724_s19 + $0xd0] sm:$0xff] %v254_v62  ;;  %289 = vst [vmem:[%s724_s19 + $0xd8] sm:$0xff] %v255_v63 }
  0x5e   : > { %290 = vst [vmem:[%s724_s19 + $0xe0] sm:$0xff] %v256_v0  ;;  %291 = vst [vmem:[%s724_s19 + $0xe8] sm:$0xff] %v257_v4 }
  0x5f   : > { %292 = vst [vmem:[%s724_s19 + $0xf0] sm:$0xff] %v258_v5  ;;  %293 = vst [vmem:[%s724_s19 + $0xf8] sm:$0xff] %v259_v6 }
  0x60   : > { %294 = vst [vmem:[%s724_s19 + $0x100] sm:$0xff] %v260_v11  ;;  %295 = vst [vmem:[%s724_s19 + $0x108] sm:$0xff] %v261_v12 }
  0x61   : > { %s885_s16 = smov (!%p306_p6, %s305_s16), 17 }
  0x62   : > { %s810_s17 = sshll.u32 %s885_s16, 8 }
  0x63   : > { %s311_s22 = ssub.s32 4352, %s810_s17 }
  0x64   : > { %312 = vsyncadd %s297_s3, %s311_s22  ;;  %p403_p10 = scmp.ne.s32.totalorder %s810_s17, 0  ;;  %s414_s20 = smul.u32 4352, %s602_s13 }
  0x65   : > { %s318_s23 = sshll.u32 %s724_s19, 4  ;;  %s563_s30 = smov [#allocation5]   ;;  %s823_s23 = int_to_ptr.vmem [resolvable:$true] %s318_s23 }
  0x66   : > { %s821_s27 = scalar_lea.hbm %s871_s2, %s414_s20  ;;  %s491_s29 = scalar_lea.vmem %s823_s23, %s810_s17 }
  0x67   : > { %p492_p9 = scmp.ne.s32.totalorder %s823_s23, %s491_s29  ;;  %s495_s4 = sshll.u32 %s563_s30, 4  ;;  %s496_s4 = int_to_ptr.vmem [resolvable:$false] %s495_s4 }
  0x68   : > { %s497_s13 = scalar_lea.vmem %s496_s4, 8704  ;;  %p498_p12 = scmp.lt.s32.totalorder %s823_s23, %s496_s4 }
  0x69   : > { %p493_p11 = pnand %p492_p9, %p403_p10  ;;  %p499_p0 = scmp.lt.s32.totalorder %s497_s13, %s491_s29 }
  0x6b   : > { %p494_p13 = pneg %p493_p11  ;;  %p500_p1 = por %p499_p0, %p498_p12 }
  0x6d   : > { %p501_p3 = pnand %p500_p1, %p494_p13 }
  0x6f   : > { %504 = shalt.err (!%p501_p3)
}
  0x70   : > { %s505_s7 = scalar_lea.hbm %s821_s27, %s810_s17  ;;  %s509_s26 = scalar_lea.hbm %s871_s2, 8448 }
  0x71   : > { %p506_p4 = scmp.ne.s32.totalorder %s821_s27, %s505_s7  ;;  %p510_p7 = scmp.lt.u32.totalorder %s821_s27, %s871_s2 }
  0x72   : > { %p511_p8 = scmp.lt.u32.totalorder %s509_s26, %s505_s7  ;;  %p513_p9 = scmp.lt.u32.totalorder %s505_s7, %s821_s27 }
  0x73   : > { %p507_p5 = pnand %p506_p4, %p403_p10 }
  0x74   : > { %p512_p6 = por %p511_p8, %p510_p7 }
  0x75   : > { %p508_p2 = pneg %p507_p5 }
  0x76   : > { %p514_p11 = por %p513_p9, %p512_p6 }
  0x78   : > { %p515_p13 = pnand %p514_p11, %p508_p2 }
  0x7a   : > { %518 = shalt.err (!%p515_p13)
}
  0x7b   : > { %s564_s6 = smov 256   ;;  %s565_s16 = smov 16  }
  0x7c   : > { %324 = dma.vmem_to_hbm [thread:$0]  (%p403_p10), %s823_s23, %s810_s17, %s821_s27, %s297_s3, %s564_s6, %s564_s6, %s565_s16  }
  0x7d PF: > { %s333_s22 = sand.u32 1, %s545_s9   ;;  %p876_p12 = scmp.ne.s32.totalorder %s875_s21, 0 }
  0x7e   : > { %p877_p0 = scmp.ge.s32.totalorder %s557_s12, 2  ;;  %s334_s20 = scalar_lea.sflag [#allocation4], %s333_s22 }
  0x80   : > { %p421_p1 = pnand %p877_p0, %p876_p12 }
  0x82   : > { %540 = dma.done.wait (!%p421_p1), %s334_s20, 4352  }
  0x83   : > { %542 = vsyncadd (!%p421_p1), %s334_s20, 4294962944  ;;  %p15_p3 = scmp.ge.s32.totalorder %s606_s15, 4   ;;  %s878_s9 = smov %s549_s10 }
  0x84   : > { %s879_s10 = smov %s553_s11  ;;  %s880_s11 = smov %s618_s18 }
  0x85   : > { %s881_s12 = smov %s606_s15  ;;  %17 = sbr.rel (!%p15_p3) target bundleno = 5 (0x5), region = 73 }
  0x8c   :  { %339 = vsyncpa [#allocation3], 1 }
  0x8d   :  { %341 = vsyncpa [#allocation3 + $0x1], 1 }
  0x8e   :  { %342 = vsyncpa [#allocation4], 1 }
  0x8f   :  { %344 = vsyncpa [#allocation4 + $0x1], 1 }

</bundles_post_ra>
